<compile_context>
chip_gen: v6e
topology: v6e:2x2x1
jax: 0.10.0
libtpu: 0.0.40
codegen_flags: <defaults>
</compile_context>

<pallas_src>
import jax
import jax.numpy as jnp
from jax.experimental import pallas as pl
from jax.experimental.pallas import tpu as pltpu

LANE = 128


def _round_up(x, m):
    return ((x + m - 1) // m) * m


def _pick_tile(n):
    n_lane = _round_up(max(n, 1), LANE)
    if n_lane <= LANE:
        return LANE
    # >= 2 row blocks so the v7x megacore can shard the "parallel" axis; cap the adjacency
    # tile at 1024 (double-buffered bf16 = 4 MiB) -- comfortably inside default scoped VMEM
    # on v5e / v6e / v7x even with the resident x / hw slabs.
    return max(LANE, min(1024, _round_up((n_lane + 1) // 2, LANE)))


def protein_ligand_gnn(x, edge_index, params):
    """x: (N, C_in) float32; edge_index: (2, E) int32 [src; dst]."""
    N, in_c = x.shape
    hid_c = params["wl1"].shape[1]
    out_c = params["wl2"].shape[1]

    tile = _pick_tile(N)
    n_pad = _round_up(N, tile)
    n_blk = n_pad // tile

    cin_p = _round_up(in_c, LANE)
    hid_p = _round_up(hid_c, LANE)
    out_p = _round_up(out_c, LANE)

    src, dst = edge_index[0], edge_index[1]

    # ---- wrapper glue -------------------------------------------------------------------
    # TODO(synk): for realistic protein-ligand sizes (N in the thousands, sparse edges),
    # replace the dense N^2 adjacency with CSR neighbor lists + scalar-prefetch gather.
    adj = jnp.zeros((n_pad, n_pad), jnp.bfloat16).at[dst, src].add(1.0)  # 0/1 exact in bf16
    deg = jnp.zeros((n_pad,), jnp.float32).at[dst].add(1.0)              # O(E) segment add
    inv_deg = (1.0 / jnp.maximum(deg, 1.0)).reshape(n_pad, 1)

    # Block-sparsity metadata (scalar-prefetched to SMEM): per-tile edge counts, plus a
    # "previous nonzero K block" map so empty tiles repeat the last block index (DMA elided).
    blk_nnz = jnp.zeros((n_blk, n_blk), jnp.int32).at[dst // tile, src // tile].add(1)
    ar = jnp.arange(n_blk, dtype=jnp.int32)
    kmap = jnp.where(blk_nnz > 0, ar[None, :], -1)
    kmap = jnp.maximum(jax.lax.cummax(kmap, axis=1), 0).astype(jnp.int32)

    x_p = jnp.zeros((n_pad, cin_p), jnp.bfloat16).at[:N, :in_c].set(x.astype(jnp.bfloat16))

    def pad2(w, r, c, dt):
        return jnp.zeros((r, c), dt).at[:w.shape[0], :w.shape[1]].set(w.astype(dt))

    # Fused weights: one K=2*cin matmul for [agg | x], one N=2*out matmul for [h@Wl2 | h@Wr2].
    w1 = jnp.concatenate([pad2(params["wl1"], cin_p, hid_p, jnp.bfloat16),
                          pad2(params["wr1"], cin_p, hid_p, jnp.bfloat16)], axis=0)
    w2 = jnp.concatenate([pad2(params["wl2"], hid_p, out_p, jnp.bfloat16),
                          pad2(params["wr2"], hid_p, out_p, jnp.bfloat16)], axis=1)
    b1 = pad2(params["b1"], 1, hid_p, jnp.float32)
    b2 = pad2(params["b2"], 1, out_p, jnp.float32)

    # ---- specs --------------------------------------------------------------------------
    adj_map = lambda i, k, nnz, km: (i, km[i, k])     # empty tiles repeat previous block
    row_map = lambda i, k, nnz, km: (i, 0)
    full_map = lambda i, k, nnz, km: (0, 0)

    adj_spec = pl.BlockSpec((tile, tile), adj_map)
    invdeg_spec = pl.BlockSpec((tile, 1), row_map)

    def row_spec(c):
        return pl.BlockSpec((tile, c), row_map)

    def full_spec(r, c):                              # VMEM-resident operand (fetched once)
        return pl.BlockSpec((r, c), full_map)

    cparams = pltpu.CompilerParams(dimension_semantics=("parallel", "arbitrary"))

    # ---- layer 1 kernel: acc = sum_k adj[i,k] @ x[k];  fused epilogue -> hw, hs ----------
    def sage1_kernel(nnz_ref, kmap_ref, adj_ref, x_ref, invdeg_ref,
                     w1_ref, b1_ref, w2_ref, b2_ref,
                     hw_ref, hs_ref, acc_ref):
        i = pl.program_id(0)
        k = pl.program_id(1)

        @pl.when(k == 0)
        def _():
            acc_ref[...] = jnp.zeros_like(acc_ref)

        @pl.when(nnz_ref[i, k] > 0)                   # skip compute for empty adj tiles
        def _():
            off = pl.multiple_of(k * tile, LANE)
            acc_ref[...] += jnp.dot(adj_ref[...], x_ref[pl.ds(off, tile), :],
                                    preferred_element_type=jnp.float32)

        @pl.when(k == pl.num_programs(1) - 1)
        def _():
            agg = (acc_ref[...] * invdeg_ref[...]).astype(jnp.bfloat16)
            roff = pl.multiple_of(i * tile, LANE)
            xi = x_ref[pl.ds(roff, tile), :]
            h = jnp.dot(jnp.concatenate([agg, xi], axis=1), w1_ref[...],
                        preferred_element_type=jnp.float32)
            h = jnp.maximum(h + b1_ref[...], 0.0).astype(jnp.bfloat16)
            hw_hs = jnp.dot(h, w2_ref[...], preferred_element_type=jnp.float32)
            hw_ref[...] = hw_hs[:, :out_p].astype(jnp.bfloat16)      # feeds layer-2 MXU
            hs_ref[...] = hw_hs[:, out_p:] + b2_ref[...]             # self branch + bias

    gs1 = pltpu.PrefetchScalarGridSpec(
        num_scalar_prefetch=2,
        grid=(n_blk, n_blk),
        in_specs=[adj_spec,
                  full_spec(n_pad, cin_p),            # x, VMEM-resident bf16
                  invdeg_spec,
                  full_spec(2 * cin_p, hid_p),        # [Wl1; Wr1] bf16
                  full_spec(1, hid_p),                # b1
                  full_spec(hid_p, 2 * out_p),        # [Wl2 | Wr2] bf16
                  full_spec(1, out_p)],               # b2
        out_specs=(row_spec(out_p), row_spec(out_p)),
        scratch_shapes=[pltpu.VMEM((tile, cin_p), jnp.float32)])

    ce1 = pl.CostEstimate(
        flops=2 * n_pad * n_pad * cin_p
              + 2 * n_pad * (2 * cin_p) * hid_p
              + 2 * n_pad * hid_p * (2 * out_p),
        transcendentals=0,
        bytes_accessed=2 * n_pad * n_pad + 2 * n_pad * cin_p + 6 * n_pad * out_p)

    hw, hs = pl.pallas_call(
        sage1_kernel,
        out_shape=(jax.ShapeDtypeStruct((n_pad, out_p), jnp.bfloat16),
                   jax.ShapeDtypeStruct((n_pad, out_p), jnp.float32)),
        grid_spec=gs1,
        compiler_params=cparams,
        cost_estimate=ce1,
    )(blk_nnz, kmap, adj, x_p, inv_deg, w1, b1, w2, b2)

    # ---- layer 2 kernel: o = (sum_k adj[i,k] @ hw[k]) * invdeg + hs -----------------------
    def sage2_kernel(nnz_ref, kmap_ref, adj_ref, hw_ref, invdeg_ref, hs_ref,
                     o_ref, acc_ref):
        i = pl.program_id(0)
        k = pl.program_id(1)

        @pl.when(k == 0)
        def _():
            acc_ref[...] = jnp.zeros_like(acc_ref)

        @pl.when(nnz_ref[i, k] > 0)
        def _():
            off = pl.multiple_of(k * tile, LANE)
            acc_ref[...] += jnp.dot(adj_ref[...], hw_ref[pl.ds(off, tile), :],
                                    preferred_element_type=jnp.float32)

        @pl.when(k == pl.num_programs(1) - 1)
        def _():
            o_ref[...] = acc_ref[...] * invdeg_ref[...] + hs_ref[...]

    gs2 = pltpu.PrefetchScalarGridSpec(
        num_scalar_prefetch=2,
        grid=(n_blk, n_blk),
        in_specs=[adj_spec,
                  full_spec(n_pad, out_p),            # h @ Wl2, VMEM-resident bf16
                  invdeg_spec,
                  row_spec(out_p)],                   # hs = h @ Wr2 + b2
        out_specs=row_spec(out_p),
        scratch_shapes=[pltpu.VMEM((tile, out_p), jnp.float32)])

    ce2 = pl.CostEstimate(
        flops=2 * n_pad * n_pad * out_p,
        transcendentals=0,
        bytes_accessed=2 * n_pad * n_pad + 2 * n_pad * out_p + 8 * n_pad * out_p)

    o = pl.pallas_call(
        sage2_kernel,
        out_shape=jax.ShapeDtypeStruct((n_pad, out_p), jnp.float32),
        grid_spec=gs2,
        compiler_params=cparams,
        cost_estimate=ce2,
    )(blk_nnz, kmap, adj, hw, inv_deg, hs)

    # ---- global_mean_pool over the real (unpadded) nodes ---------------------------------
    return jnp.mean(o[:N, :out_c], axis=0, keepdims=True)


def init_params(key, in_channels, hidden_channels, out_channels):
    ks = jax.random.split(key, 6)
    s1 = 1.0 / jnp.sqrt(in_channels)
    s2 = 1.0 / jnp.sqrt(hidden_channels)
    return {
        "wl1": jax.random.uniform(ks[0], (in_channels, hidden_channels), jnp.float32, -s1, s1),
        "wr1": jax.random.uniform(ks[1], (in_channels, hidden_channels), jnp.float32, -s1, s1),
        "b1":  jax.random.uniform(ks[2], (1, hidden_channels), jnp.float32, -s1, s1),
        "wl2": jax.random.uniform(ks[3], (hidden_channels, out_channels), jnp.float32, -s2, s2),
        "wr2": jax.random.uniform(ks[4], (hidden_channels, out_channels), jnp.float32, -s2, s2),
        "b2":  jax.random.uniform(ks[5], (1, out_channels), jnp.float32, -s2, s2),
    }


def reference(x, edge_index, params):
    N = x.shape[0]
    src, dst = edge_index[0], edge_index[1]
    adj = jnp.zeros((N, N), jnp.float32).at[dst, src].add(1.0)
    a = adj / jnp.maximum(adj.sum(axis=1, keepdims=True), 1.0)
    h = jnp.maximum(a @ x @ params["wl1"] + x @ params["wr1"] + params["b1"], 0.0)
    o = a @ h @ params["wl2"] + h @ params["wr2"] + params["b2"]
    return jnp.mean(o, axis=0, keepdims=True)


if __name__ == "__main__":
    key = jax.random.PRNGKey(0)
    k_x, k_p = jax.random.split(key)

    N, in_c, hid_c, out_c = 8, 4, 32, 16
    x = jax.random.normal(k_x, (N, in_c), jnp.float32)

    # Deterministic ring graph (both directions): 2*N edges.
    src = jnp.concatenate([jnp.arange(N), jnp.arange(N)])
    dst = jnp.concatenate([(jnp.arange(N) + 1) % N, (jnp.arange(N) - 1) % N])
    edge_index = jnp.stack([src, dst]).astype(jnp.int32)

    params = init_params(k_p, in_c, hid_c, out_c)

    y = protein_ligand_gnn(x, edge_index, params)
    y = jax.block_until_ready(y)

    y_ref = reference(x, edge_index, params)
    assert y.shape == (1, out_c)
    # bf16 activations / weights in the kernel (f32 accumulation): loosened tolerance.
    assert jnp.allclose(y, y_ref, atol=5e-2, rtol=5e-2)
    print("KERNEL_OK")
</pallas_src>

<mosaic_0001>
module attributes {stable_mosaic.version = 11 : i64} {
  func.func @sage1_kernel(%arg0: i32, %arg1: i32, %arg2: memref<1x1xi32, #tpu.memory_space<smem>>, %arg3: memref<1x1xi32, #tpu.memory_space<smem>>, %arg4: memref<128x128xbf16, #tpu.memory_space<vmem>>, %arg5: memref<128x128xbf16, #tpu.memory_space<vmem>>, %arg6: memref<128x1xf32, #tpu.memory_space<vmem>>, %arg7: memref<256x128xbf16, #tpu.memory_space<vmem>>, %arg8: memref<1x128xf32, #tpu.memory_space<vmem>>, %arg9: memref<128x256xbf16, #tpu.memory_space<vmem>>, %arg10: memref<1x128xf32, #tpu.memory_space<vmem>>, %arg11: memref<128x128xbf16, #tpu.memory_space<vmem>>, %arg12: memref<128x128xf32, #tpu.memory_space<vmem>>, %arg13: memref<128x128xf32, #tpu.memory_space<vmem>>) attributes {dimension_semantics = [#tpu.dimension_semantics<parallel>, #tpu.dimension_semantics<arbitrary>], iteration_bounds = array<i64: 1, 1>, scalar_prefetch = 2 : i64, scratch_operands = 1 : i64, tpu.core_type = #tpu.core_type<tc>, window_params = [{transform_indices = @transform_0, window_bounds = array<i64: 128, 128>}, {pipeline_mode = #tpu.pipeline_mode<synchronous>, transform_indices = @transform_1, window_bounds = array<i64: 128, 128>}, {transform_indices = @transform_2, window_bounds = array<i64: 128, 1>}, {pipeline_mode = #tpu.pipeline_mode<synchronous>, transform_indices = @transform_3, window_bounds = array<i64: 256, 128>}, {pipeline_mode = #tpu.pipeline_mode<synchronous>, transform_indices = @transform_4, window_bounds = array<i64: 1, 128>}, {pipeline_mode = #tpu.pipeline_mode<synchronous>, transform_indices = @transform_5, window_bounds = array<i64: 128, 256>}, {pipeline_mode = #tpu.pipeline_mode<synchronous>, transform_indices = @transform_6, window_bounds = array<i64: 1, 128>}, {transform_indices = @transform_7, window_bounds = array<i64: 128, 128>}, {transform_indices = @transform_8, window_bounds = array<i64: 128, 128>}]} {
    %c0_i32 = arith.constant 0 : i32
    %0 = arith.cmpi eq, %arg1, %c0_i32 : i32
    %1 = arith.extui %0 : i1 to i32
    %c0_i32_0 = arith.constant 0 : i32
    %2 = arith.cmpi ne, %1, %c0_i32_0 : i32
    scf.if %2 {
      %cst = arith.constant 0.000000e+00 : f32
      %12 = vector.broadcast %cst : f32 to vector<128x128xf32>
      %c0 = arith.constant 0 : index
      %c0_5 = arith.constant 0 : index
      %13 = vector.load %arg13[%c0, %c0_5] : memref<128x128xf32, #tpu.memory_space<vmem>>, vector<128x128xf32>
      tpu.vector_store %arg13[%c0, %c0_5], %12 {strides = array<i32>} : memref<128x128xf32, #tpu.memory_space<vmem>>, vector<128x128xf32>,
    } else {
    }
    %3 = arith.index_cast %arg0 : i32 to index
    %4 = arith.index_cast %arg1 : i32 to index
    %5 = memref.load %arg2[%3, %4] : memref<1x1xi32, #tpu.memory_space<smem>>
    %c0_i32_1 = arith.constant 0 : i32
    %6 = arith.cmpi sgt, %5, %c0_i32_1 : i32
    %7 = arith.extui %6 : i1 to i32
    %c0_i32_2 = arith.constant 0 : i32
    %8 = arith.cmpi ne, %7, %c0_i32_2 : i32
    scf.if %8 {
      %c128_i32 = arith.constant 128 : i32
      %12 = arith.muli %arg1, %c128_i32 : i32
      %13 = tpu.assume_multiple %12, 128 : i32
      %c0 = arith.constant 0 : index
      %c0_5 = arith.constant 0 : index
      %14 = vector.load %arg13[%c0, %c0_5] : memref<128x128xf32, #tpu.memory_space<vmem>>, vector<128x128xf32>
      %c0_6 = arith.constant 0 : index
      %c0_7 = arith.constant 0 : index
      %15 = vector.load %arg4[%c0_6, %c0_7] : memref<128x128xbf16, #tpu.memory_space<vmem>>, vector<128x128xbf16>
      %16 = arith.index_cast %13 : i32 to index
      %c0_8 = arith.constant 0 : index
      %17 = vector.load %arg5[%16, %c0_8] : memref<128x128xbf16, #tpu.memory_space<vmem>>, vector<128x128xbf16>
      %cst = arith.constant dense<0.000000e+00> : vector<128x128xf32>
      %18 = tpu.matmul %15, %17, %cst {dimension_numbers = #tpu.dot_dimension_numbers<[1], [0], [0], [1], [0, 0, 1, 1], [], []>} : vector<128x128xbf16>, vector<128x128xbf16>, vector<128x128xf32> -> vector<128x128xf32>
      %19 = arith.addf %14, %18 : vector<128x128xf32>
      %c0_9 = arith.constant 0 : index
      %c0_10 = arith.constant 0 : index
      %20 = vector.load %arg13[%c0_9, %c0_10] : memref<128x128xf32, #tpu.memory_space<vmem>>, vector<128x128xf32>
      tpu.vector_store %arg13[%c0_9, %c0_10], %19 {strides = array<i32>} : memref<128x128xf32, #tpu.memory_space<vmem>>, vector<128x128xf32>,
    } else {
    }
    %c0_i32_3 = arith.constant 0 : i32
    %9 = arith.cmpi eq, %arg1, %c0_i32_3 : i32
    %10 = arith.extui %9 : i1 to i32
    %c0_i32_4 = arith.constant 0 : i32
    %11 = arith.cmpi ne, %10, %c0_i32_4 : i32
    scf.if %11 {
      %c0 = arith.constant 0 : index
      %c0_5 = arith.constant 0 : index
      %12 = vector.load %arg13[%c0, %c0_5] : memref<128x128xf32, #tpu.memory_space<vmem>>, vector<128x128xf32>
      %c0_6 = arith.constant 0 : index
      %c0_7 = arith.constant 0 : index
      %13 = vector.load %arg6[%c0_6, %c0_7] : memref<128x1xf32, #tpu.memory_space<vmem>>, vector<128x1xf32>
      %14 = vector.broadcast %13 : vector<128x1xf32> to vector<128x128xf32>
      %15 = arith.mulf %12, %14 : vector<128x128xf32>
      %16 = arith.truncf %15 : vector<128x128xf32> to vector<128x128xbf16>
      %c128_i32 = arith.constant 128 : i32
      %17 = arith.muli %arg0, %c128_i32 : i32
      %18 = tpu.assume_multiple %17, 128 : i32
      %19 = arith.index_cast %18 : i32 to index
      %c0_8 = arith.constant 0 : index
      %20 = vector.load %arg5[%19, %c0_8] : memref<128x128xbf16, #tpu.memory_space<vmem>>, vector<128x128xbf16>
      %21 = tpu.concatenate %16, %20 in 1 : vector<128x128xbf16>, vector<128x128xbf16> -> vector<128x256xbf16>
      %c0_9 = arith.constant 0 : index
      %c0_10 = arith.constant 0 : index
      %22 = vector.load %arg7[%c0_9, %c0_10] : memref<256x128xbf16, #tpu.memory_space<vmem>>, vector<256x128xbf16>
      %cst = arith.constant dense<0.000000e+00> : vector<128x128xf32>
      %23 = tpu.matmul %21, %22, %cst {dimension_numbers = #tpu.dot_dimension_numbers<[1], [0], [0], [1], [0, 0, 1, 1], [], []>} : vector<128x256xbf16>, vector<256x128xbf16>, vector<128x128xf32> -> vector<128x128xf32>
      %c0_11 = arith.constant 0 : index
      %c0_12 = arith.constant 0 : index
      %24 = vector.load %arg8[%c0_11, %c0_12] : memref<1x128xf32, #tpu.memory_space<vmem>>, vector<1x128xf32>
      %25 = vector.broadcast %24 : vector<1x128xf32> to vector<128x128xf32>
      %26 = arith.addf %23, %25 : vector<128x128xf32>
      %cst_13 = arith.constant 0.000000e+00 : f32
      %27 = vector.broadcast %cst_13 : f32 to vector<128x128xf32>
      %28 = arith.maximumf %26, %27 : vector<128x128xf32>
      %29 = arith.truncf %28 : vector<128x128xf32> to vector<128x128xbf16>
      %c0_14 = arith.constant 0 : index
      %c0_15 = arith.constant 0 : index
      %30 = vector.load %arg9[%c0_14, %c0_15] : memref<128x256xbf16, #tpu.memory_space<vmem>>, vector<128x256xbf16>
      %cst_16 = arith.constant dense<0.000000e+00> : vector<128x256xf32>
      %31 = tpu.matmul %29, %30, %cst_16 {dimension_numbers = #tpu.dot_dimension_numbers<[1], [0], [0], [1], [0, 0, 1, 1], [], []>} : vector<128x128xbf16>, vector<128x256xbf16>, vector<128x256xf32> -> vector<128x256xf32>
      %32 = vector.extract_strided_slice %31 {offsets = [0, 0], sizes = [128, 128], strides = [1, 1]} : vector<128x256xf32> to vector<128x128xf32>
      %33 = arith.truncf %32 : vector<128x128xf32> to vector<128x128xbf16>
      %c0_17 = arith.constant 0 : index
      %c0_18 = arith.constant 0 : index
      %34 = vector.load %arg11[%c0_17, %c0_18] : memref<128x128xbf16, #tpu.memory_space<vmem>>, vector<128x128xbf16>
      tpu.vector_store %arg11[%c0_17, %c0_18], %33 {strides = array<i32>} : memref<128x128xbf16, #tpu.memory_space<vmem>>, vector<128x128xbf16>,
      %35 = vector.extract_strided_slice %31 {offsets = [0, 128], sizes = [128, 128], strides = [1, 1]} : vector<128x256xf32> to vector<128x128xf32>
      %c0_19 = arith.constant 0 : index
      %c0_20 = arith.constant 0 : index
      %36 = vector.load %arg10[%c0_19, %c0_20] : memref<1x128xf32, #tpu.memory_space<vmem>>, vector<1x128xf32>
      %37 = vector.broadcast %36 : vector<1x128xf32> to vector<128x128xf32>
      %38 = arith.addf %35, %37 : vector<128x128xf32>
      %c0_21 = arith.constant 0 : index
      %c0_22 = arith.constant 0 : index
      %39 = vector.load %arg12[%c0_21, %c0_22] : memref<128x128xf32, #tpu.memory_space<vmem>>, vector<128x128xf32>
      tpu.vector_store %arg12[%c0_21, %c0_22], %38 {strides = array<i32>} : memref<128x128xf32, #tpu.memory_space<vmem>>, vector<128x128xf32>,
    } else {
    }
    return
  }
  func.func @transform_0(%arg0: i32, %arg1: i32, %arg2: memref<1x1xi32, #tpu.memory_space<smem>>, %arg3: memref<1x1xi32, #tpu.memory_space<smem>>) -> (i32, i32) {
    %0 = arith.index_cast %arg0 : i32 to index
    %1 = arith.index_cast %arg1 : i32 to index
    %2 = memref.load %arg3[%0, %1] : memref<1x1xi32, #tpu.memory_space<smem>>
    %c0_i32 = arith.constant 0 : i32
    return %arg0, %2 : i32, i32
  }
  func.func @transform_1(%arg0: i32, %arg1: i32, %arg2: memref<1x1xi32, #tpu.memory_space<smem>>, %arg3: memref<1x1xi32, #tpu.memory_space<smem>>) -> (i32, i32) {
    %c0_i32 = arith.constant 0 : i32
    %c0_i32_0 = arith.constant 0 : i32
    %c0_i32_1 = arith.constant 0 : i32
    return %c0_i32, %c0_i32_0 : i32, i32
  }
  func.func @transform_2(%arg0: i32, %arg1: i32, %arg2: memref<1x1xi32, #tpu.memory_space<smem>>, %arg3: memref<1x1xi32, #tpu.memory_space<smem>>) -> (i32, i32) {
    %c0_i32 = arith.constant 0 : i32
    %c0_i32_0 = arith.constant 0 : i32
    return %arg0, %c0_i32 : i32, i32
  }
  func.func @transform_3(%arg0: i32, %arg1: i32, %arg2: memref<1x1xi32, #tpu.memory_space<smem>>, %arg3: memref<1x1xi32, #tpu.memory_space<smem>>) -> (i32, i32) {
    %c0_i32 = arith.constant 0 : i32
    %c0_i32_0 = arith.constant 0 : i32
    %c0_i32_1 = arith.constant 0 : i32
    return %c0_i32, %c0_i32_0 : i32, i32
  }
  func.func @transform_4(%arg0: i32, %arg1: i32, %arg2: memref<1x1xi32, #tpu.memory_space<smem>>, %arg3: memref<1x1xi32, #tpu.memory_space<smem>>) -> (i32, i32) {
    %c0_i32 = arith.constant 0 : i32
    %c0_i32_0 = arith.constant 0 : i32
    %c0_i32_1 = arith.constant 0 : i32
    return %c0_i32, %c0_i32_0 : i32, i32
  }
  func.func @transform_5(%arg0: i32, %arg1: i32, %arg2: memref<1x1xi32, #tpu.memory_space<smem>>, %arg3: memref<1x1xi32, #tpu.memory_space<smem>>) -> (i32, i32) {
    %c0_i32 = arith.constant 0 : i32
    %c0_i32_0 = arith.constant 0 : i32
    %c0_i32_1 = arith.constant 0 : i32
    return %c0_i32, %c0_i32_0 : i32, i32
  }
  func.func @transform_6(%arg0: i32, %arg1: i32, %arg2: memref<1x1xi32, #tpu.memory_space<smem>>, %arg3: memref<1x1xi32, #tpu.memory_space<smem>>) -> (i32, i32) {
    %c0_i32 = arith.constant 0 : i32
    %c0_i32_0 = arith.constant 0 : i32
    %c0_i32_1 = arith.constant 0 : i32
    return %c0_i32, %c0_i32_0 : i32, i32
  }
  func.func @transform_7(%arg0: i32, %arg1: i32, %arg2: memref<1x1xi32, #tpu.memory_space<smem>>, %arg3: memref<1x1xi32, #tpu.memory_space<smem>>) -> (i32, i32) {
    %c0_i32 = arith.constant 0 : i32
    %c0_i32_0 = arith.constant 0 : i32
    return %arg0, %c0_i32 : i32, i32
  }
  func.func @transform_8(%arg0: i32, %arg1: i32, %arg2: memref<1x1xi32, #tpu.memory_space<smem>>, %arg3: memref<1x1xi32, #tpu.memory_space<smem>>) -> (i32, i32) {
    %c0_i32 = arith.constant 0 : i32
    %c0_i32_0 = arith.constant 0 : i32
    return %arg0, %c0_i32 : i32, i32
  }
}

</mosaic_0001>

<bundles_post_ra>
// kernel: tpu_custom_call.1
= control target key start
LH: loop header
LB: loop body
LE: loop exit
PB: predicated region body
PF: predicated region fallthrough
CT: control target
= control target key end

     0   :  { %18 = vsyncpa [#allocation7], 0  ;;  %s1940_s0 = inlined_call_operand.<no memory space> [shape: s32[1,1], index: 0, kind: input, shape index: {}]   ;;  %s1941_s1 = inlined_call_operand.<no memory space> [shape: s32[1,1], index: 1, kind: input, shape index: {}]   ;;  %s1942_s2 = inlined_call_operand.hbm [shape: bf16[128,128], index: 2, kind: input, shape index: {}]   ;;  %s1943_s3 = inlined_call_operand.hbm [shape: bf16[128,128], index: 3, kind: input, shape index: {}]   ;;  %s1944_s4 = inlined_call_operand.vmem [shape: f32[128,1], index: 4, kind: input, shape index: {}]   ;;  %s1945_s5 = inlined_call_operand.vmem [shape: bf16[256,128], index: 5, kind: input, shape index: {}]   ;;  %s1946_s6 = inlined_call_operand.vmem [shape: f32[1,128], index: 6, kind: input, shape index: {}]   ;;  %s1947_s7 = inlined_call_operand.hbm [shape: bf16[128,256], index: 7, kind: input, shape index: {}]   ;;  %s1948_s8 = inlined_call_operand.vmem [shape: f32[1,128], index: 8, kind: input, shape index: {}]   ;;  %s1949_s9 = inlined_call_operand.hbm [shape: bf16[128,128], index: 9, kind: output, shape index: {0}]   ;;  %s1950_s10 = inlined_call_operand.hbm [shape: f32[128,128], index: 10, kind: output, shape index: {1}]  }
   0x1   :  { %19 = vsyncpa [#allocation10], 0 }
   0x2   :  { %20 = vsyncpa [#allocation8], 0 }
   0x3   :  { %21 = vsyncpa [#allocation14], 0  ;;  %s1224_s15 = sshll.u32 %s1941_s1, 6  ;;  %s1678_s16 = smov [#allocation9]  }
   0x4   :  { %s45_s17 = sshll.u32 %s1678_s16, 4  ;;  %s1750_s20 = scalar_lea.hbm %s1942_s2, %s1224_s15  ;;  %s46_s17 = int_to_ptr.vmem [resolvable:$true] %s45_s17 }
   0x5   :  { %s1576_s21 = scalar_lea.vmem %s46_s17, 1024  ;;  %p1581_p1 = scmp.lt.s32.totalorder %s46_s17, %s46_s17 }
   0x6   :  { %p1577_p0 = scmp.ne.s32.totalorder %s46_s17, %s1576_s21  ;;  %p1582_p2 = scmp.lt.s32.totalorder %s1576_s21, %s1576_s21 }
   0x8   :  { %p1583_p3 = por %p1582_p2, %p1581_p1 }
   0xa   :  { %p1584_p4 = pnand %p1583_p3, %p1577_p0 }
   0xc   :  { %1587 = shalt.err (!%p1584_p4)
}
   0xd   :  { %s1679_s22 = smov 64   ;;  %s1680_s1 = smov 4  }
   0xe   :  { %51 = dma.hbm_to_vmem [thread:$0]  %s1943_s3, 1024, %s46_s17, [#allocation10], %s1679_s22, %s1679_s22, %s1680_s1  }
   0xf   :  { %s1681_s25 = smov [#allocation6]   ;;  %s1682_s27 = smov [#allocation11]  }
  0x10   :  { %s33_s26 = sshll.u32 %s1681_s25, 4  ;;  %s63_s28 = sshll.u32 %s1682_s27, 4  ;;  %s34_s26 = int_to_ptr.vmem [resolvable:$true] %s33_s26  ;;  %s64_s28 = int_to_ptr.vmem [resolvable:$true] %s63_s28 }
  0x11   :  { %s1588_s29 = scalar_lea.hbm %s1750_s20, 1024  ;;  %s1590_s12 = scalar_lea.hbm %s1942_s2, 1024 }
  0x12   :  { %p1589_p5 = scmp.ne.s32.totalorder %s1750_s20, %s1588_s29  ;;  %p1591_p6 = scmp.lt.s32.totalorder %s1750_s20, %s1942_s2 }
  0x13   :  { %p1592_p7 = scmp.lt.s32.totalorder %s1590_s12, %s1588_s29 }
  0x15   :  { %p1593_p8 = por %p1592_p7, %p1591_p6 }
  0x17   :  { %p1594_p9 = pnand %p1593_p8, %p1589_p5 }
  0x19   :  { %1597 = shalt.err (!%p1594_p9)
}
  0x1a   :  { %s1598_s3 = scalar_lea.vmem %s34_s26, 1024  ;;  %p1603_p11 = scmp.lt.s32.totalorder %s34_s26, %s34_s26 }
  0x1b   :  { %p1599_p10 = scmp.ne.s32.totalorder %s34_s26, %s1598_s3  ;;  %p1604_p12 = scmp.lt.s32.totalorder %s1598_s3, %s1598_s3 }
  0x1d   :  { %p1605_p13 = por %p1604_p12, %p1603_p11 }
  0x1f   :  { %p1606_p0 = pnand %p1605_p13, %p1599_p10 }
  0x21   :  { %1609 = shalt.err (!%p1606_p0)
}
  0x22   :  { %39 = dma.hbm_to_vmem [thread:$0]  %s1750_s20, 1024, %s34_s26, [#allocation7], %s1679_s22, %s1679_s22, %s1680_s1  }
  0x23   :  { %s1618_s15 = scalar_lea.vmem %s64_s28, 2048  ;;  %p1623_p2 = scmp.lt.s32.totalorder %s64_s28, %s64_s28 }
  0x24   :  { %p1619_p1 = scmp.ne.s32.totalorder %s64_s28, %s1618_s15  ;;  %p1624_p3 = scmp.lt.s32.totalorder %s1618_s15, %s1618_s15 }
  0x26   :  { %p1625_p4 = por %p1624_p3, %p1623_p2 }
  0x28   :  { %p1626_p5 = pnand %p1625_p4, %p1619_p1 }
  0x2a   :  { %1629 = shalt.err (!%p1626_p5)
}
  0x2b   :  { %s1683_s2 = smov 128   ;;  %s1684_s16 = smov 8  }
  0x2c   :  { %69 = dma.hbm_to_vmem [thread:$0]  %s1947_s7, 2048, %s64_s28, [#allocation10], %s1683_s2, %s1683_s2, %s1684_s16  }
  0x2d   :  { %1670 = dma.done.wait [#allocation7], 1024  }
  0x2e   :  { %1671 = vsyncadd [#allocation7], 4294966272 }
  0x2f   :  { %1672 = dma.done.wait [#allocation10], 3072  }
  0x30   :  { %1673 = vsyncadd [#allocation10], 4294964224  ;;  %v1685_v0 = vmov 0.0   ;;  %p1225_p6 = scmp.le.s32.totalorder %s1940_s0, 0 }
  0x31   :  { %90 = vst [vmem:[#allocation2 + $0x30] sm:$0xff] %v1685_v0  ;;  %91 = vst [vmem:[#allocation2] sm:$0xff] %v1685_v0 }
  0x32   :  { %92 = vst [vmem:[#allocation2 + $0x58] sm:$0xff] %v1685_v0  ;;  %93 = vst [vmem:[#allocation2 + $0x18] sm:$0xff] %v1685_v0 }
  0x33   :  { %94 = vst [vmem:[#allocation2 + $0x50] sm:$0xff] %v1685_v0  ;;  %95 = vst [vmem:[#allocation2 + $0x68] sm:$0xff] %v1685_v0 }
  0x34   :  { %96 = vst [vmem:[#allocation2 + $0x8] sm:$0xff] %v1685_v0  ;;  %97 = vst [vmem:[#allocation2 + $0x48] sm:$0xff] %v1685_v0  ;;  %113 = sbr.rel (%p1225_p6) target bundleno = 300 (0x12c), region = 49 }
  0x35   :  { %98 = vst [vmem:[#allocation2 + $0x40] sm:$0xff] %v1685_v0  ;;  %99 = vst [vmem:[#allocation2 + $0x20] sm:$0xff] %v1685_v0 }
  0x36   :  { %100 = vst [vmem:[#allocation2 + $0x10] sm:$0xff] %v1685_v0  ;;  %101 = vst [vmem:[#allocation2 + $0x38] sm:$0xff] %v1685_v0 }
  0x37   :  { %102 = vst [vmem:[#allocation2 + $0x60] sm:$0xff] %v1685_v0  ;;  %103 = vst [vmem:[#allocation2 + $0x70] sm:$0xff] %v1685_v0 }
  0x38   :  { %104 = vst [vmem:[#allocation2 + $0x78] sm:$0xff] %v1685_v0  ;;  %105 = vst [vmem:[#allocation2 + $0x28] sm:$0xff] %v1685_v0 }
  0x39   :  { %v1502_v1 = vld [vmem:[#allocation9 + $0x38] sm:$0xff]   ;;  %v1503_v2 = vld [vmem:[#allocation9 + $0x30] sm:$0xff]   ;;  %v1504_v3 = vld [vmem:[#allocation9 + $0x28] sm:$0xff]  }
  0x3a   :  { %1443 = vmatprep.subr.bf16.mxu0 %v1502_v1  ;;  %1475 = vmatprep.subr.bf16.mxu1 %v1502_v1  ;;  %v1505_v4 = vld [vmem:[#allocation9 + $0x20] sm:$0xff]   ;;  %v1506_v7 = vld [vmem:[#allocation9 + $0x18] sm:$0xff]   ;;  %v1507_v8 = vld [vmem:[#allocation9 + $0x10] sm:$0xff]  }
  0x3b   :  { %1444 = vmatpush3.bf16.msra.mxu0 %v1502_v1  ;;  %1483 = vmatpush3.bf16.msra.mxu1 %v1502_v1  ;;  %v1510_v5 = vld [vmem:[#allocation6] sm:$0xff]   ;;  %v1508_v9 = vld [vmem:[#allocation9 + $0x8] sm:$0xff]   ;;  %v1514_v13 = vld [vmem:[#allocation6 + $0x10] sm:$0xff]  }
  0x3c   :  { %1445 = vmatprep.subr.bf16.mxu0 %v1503_v2  ;;  %1476 = vmatprep.subr.bf16.mxu1 %v1503_v2  ;;  %v1511_v6 = vld [vmem:[#allocation6 + $0x20] sm:$0xff]   ;;  %v1512_v11 = vld [vmem:[#allocation6 + $0x8] sm:$0xff]   ;;  %v1515_v14 = vld [vmem:[#allocation6 + $0x30] sm:$0xff]  }
  0x3d   :  { %1459 = vmatprep.mubr.bf16.mxu0 %v1510_v5  ;;  %1467 = vmatprep.mubr.bf16.mxu1 %v1511_v6  ;;  %v1509_v10 = vld [vmem:[#allocation9] sm:$0xff]   ;;  %v1513_v12 = vld [vmem:[#allocation6 + $0x28] sm:$0xff]   ;;  %v1516_v15 = vld [vmem:[#allocation6 + $0x18] sm:$0xff]  }
  0x3e   :  { %v1517_v16 = vld [vmem:[#allocation6 + $0x38] sm:$0xff]   ;;  %v125_v18 = vld [vmem:[#allocation2 + $0x10] sm:$0xff]  ;;  %v123_v22 = vld [vmem:[#allocation2 + $0x40] sm:$0xff] }
  0x3f   :  { %1446 = vmatpush3.bf16.msra.mxu0 %v1503_v2  ;;  %1484 = vmatpush3.bf16.msra.mxu1 %v1503_v2  ;;  %v117_v17 = vld [vmem:[#allocation2 + $0x58] sm:$0xff]  ;;  %v115_v21 = vld [vmem:[#allocation2 + $0x30] sm:$0xff]  ;;  %v116_v33 = vld [vmem:[#allocation2] sm:$0xff] }
  0x40   :  { %1447 = vmatprep.subr.bf16.mxu0 %v1504_v3  ;;  %1477 = vmatprep.subr.bf16.mxu1 %v1504_v3  ;;  %v118_v27 = vld [vmem:[#allocation2 + $0x18] sm:$0xff]  ;;  %v124_v34 = vld [vmem:[#allocation2 + $0x20] sm:$0xff]  ;;  %v121_v39 = vld [vmem:[#allocation2 + $0x8] sm:$0xff] }
  0x41   :  { %v126_v28 = vld [vmem:[#allocation2 + $0x38] sm:$0xff]  ;;  %v119_v45 = vld [vmem:[#allocation2 + $0x50] sm:$0xff]  ;;  %v127_v46 = vld [vmem:[#allocation2 + $0x60] sm:$0xff] }
  0x42   :  { %v129_v40 = vld [vmem:[#allocation2 + $0x78] sm:$0xff]  ;;  %v122_v51 = vld [vmem:[#allocation2 + $0x48] sm:$0xff]  ;;  %v128_v58 = vld [vmem:[#allocation2 + $0x70] sm:$0xff] }
  0x43   :  { %1448 = vmatpush3.bf16.msra.mxu0 %v1504_v3  ;;  %1485 = vmatpush3.bf16.msra.mxu1 %v1504_v3  ;;  %v130_v52 = vld [vmem:[#allocation2 + $0x28] sm:$0xff] }
  0x44   :  { %1449 = vmatprep.subr.bf16.mxu0 %v1505_v4  ;;  %1478 = vmatprep.subr.bf16.mxu1 %v1505_v4  ;;  %v120_v57 = vld [vmem:[#allocation2 + $0x68] sm:$0xff] }
  0x47   :  { %1450 = vmatpush3.bf16.msra.mxu0 %v1505_v4  ;;  %1486 = vmatpush3.bf16.msra.mxu1 %v1505_v4 }
  0x48   :  { %1451 = vmatprep.subr.bf16.mxu0 %v1506_v7  ;;  %1479 = vmatprep.subr.bf16.mxu1 %v1506_v7 }
  0x4b   :  { %1452 = vmatpush3.bf16.msra.mxu0 %v1506_v7  ;;  %1487 = vmatpush3.bf16.msra.mxu1 %v1506_v7 }
  0x4c   :  { %1453 = vmatprep.subr.bf16.mxu0 %v1507_v8  ;;  %1480 = vmatprep.subr.bf16.mxu1 %v1507_v8 }
  0x4f   :  { %1454 = vmatpush3.bf16.msra.mxu0 %v1507_v8  ;;  %1488 = vmatpush3.bf16.msra.mxu1 %v1507_v8 }
  0x50   :  { %1455 = vmatprep.subr.bf16.mxu0 %v1508_v9  ;;  %1481 = vmatprep.subr.bf16.mxu1 %v1508_v9 }
  0x53   :  { %1456 = vmatpush3.bf16.msra.mxu0 %v1508_v9  ;;  %1489 = vmatpush3.bf16.msra.mxu1 %v1508_v9 }
  0x54   :  { %1457 = vmatprep.subr.bf16.mxu0 %v1509_v10  ;;  %1482 = vmatprep.subr.bf16.mxu1 %v1509_v10 }
  0x57   :  { %1458 = vmatpush3.bf16.msra.mxu0 %v1509_v10  ;;  %1490 = vmatpush3.bf16.msra.mxu1 %v1509_v10 }
  0x5a   :  { %1460 = vmatmul.mubr.bf16.vlgmr.msra.gmra.mxu0 %v1512_v11  ;;  %1468 = vmatmul.mubr.bf16.vlgmr.msra.gmra.mxu1 %v1513_v12 }
  0x5b   :  { %1463 = vmatprep.mubr.bf16.mxu0 %v1514_v13  ;;  %1471 = vmatprep.mubr.bf16.mxu1 %v1515_v14 }
  0x62   :  { %1464 = vmatmul.mubr.bf16.gmra.mxu0 %v1516_v15  ;;  %1472 = vmatmul.mubr.bf16.gmra.mxu1 %v1517_v16 }
 0x11a   :  { %v1461_v19 = vpop.f32.mrf.mxu0  ;;  %v1469_v20 = vpop.f32.mrf.mxu1 }
 0x11b   :  { %v362_v23 = vadd.f32 %v1461_v19, %v117_v17  ;;  %v370_v24 = vadd.f32 %v1469_v20, %v125_v18 }
 0x11c   :  { %v297_v25 = vpop.f32.mrf.mxu0  ;;  %v329_v26 = vpop.f32.mrf.mxu1 }
 0x11d   :  { %378 = vst [vmem:[#allocation2 + $0x58] sm:$0xff] %v362_v23  ;;  %386 = vst [vmem:[#allocation2 + $0x10] sm:$0xff] %v370_v24  ;;  %v360_v29 = vadd.f32 %v297_v25, %v115_v21  ;;  %v368_v30 = vadd.f32 %v329_v26, %v123_v22 }
 0x11e   :  { %v1462_v31 = vpop.f32.mrf.mxu0  ;;  %v1470_v32 = vpop.f32.mrf.mxu1 }
 0x11f   :  { %376 = vst [vmem:[#allocation2 + $0x30] sm:$0xff] %v360_v29  ;;  %384 = vst [vmem:[#allocation2 + $0x40] sm:$0xff] %v368_v30  ;;  %v363_v35 = vadd.f32 %v1462_v31, %v118_v27  ;;  %v371_v36 = vadd.f32 %v1470_v32, %v126_v28 }
 0x120   :  { %v300_v37 = vpop.f32.mrf.mxu0  ;;  %v332_v38 = vpop.f32.mrf.mxu1 }
 0x121   :  { %379 = vst [vmem:[#allocation2 + $0x18] sm:$0xff] %v363_v35  ;;  %387 = vst [vmem:[#allocation2 + $0x38] sm:$0xff] %v371_v36  ;;  %v361_v41 = vadd.f32 %v300_v37, %v116_v33  ;;  %v369_v42 = vadd.f32 %v332_v38, %v124_v34 }
 0x122   :  { %v1465_v43 = vpop.f32.mrf.mxu0  ;;  %v1473_v44 = vpop.f32.mrf.mxu1 }
 0x123   :  { %377 = vst [vmem:[#allocation2] sm:$0xff] %v361_v41  ;;  %385 = vst [vmem:[#allocation2 + $0x20] sm:$0xff] %v369_v42  ;;  %v366_v47 = vadd.f32 %v1465_v43, %v121_v39  ;;  %v374_v48 = vadd.f32 %v1473_v44, %v129_v40 }
 0x124   :  { %v313_v49 = vpop.f32.mrf.mxu0  ;;  %v345_v50 = vpop.f32.mrf.mxu1 }
 0x125   :  { %382 = vst [vmem:[#allocation2 + $0x8] sm:$0xff] %v366_v47  ;;  %390 = vst [vmem:[#allocation2 + $0x78] sm:$0xff] %v374_v48  ;;  %v364_v53 = vadd.f32 %v313_v49, %v119_v45  ;;  %v372_v54 = vadd.f32 %v345_v50, %v127_v46 }
 0x126   :  { %v1466_v55 = vpop.f32.mrf.mxu0  ;;  %v1474_v56 = vpop.f32.mrf.mxu1 }
 0x127   :  { %380 = vst [vmem:[#allocation2 + $0x50] sm:$0xff] %v364_v53  ;;  %388 = vst [vmem:[#allocation2 + $0x60] sm:$0xff] %v372_v54  ;;  %v367_v59 = vadd.f32 %v1466_v55, %v122_v51  ;;  %v375_v60 = vadd.f32 %v1474_v56, %v130_v52 }
 0x128   :  { %v316_v61 = vpop.f32.mrf.mxu0  ;;  %v348_v62 = vpop.f32.mrf.mxu1 }
 0x129   :  { %383 = vst [vmem:[#allocation2 + $0x48] sm:$0xff] %v367_v59  ;;  %391 = vst [vmem:[#allocation2 + $0x28] sm:$0xff] %v375_v60  ;;  %v365_v63 = vadd.f32 %v316_v61, %v120_v57  ;;  %v373_v0 = vadd.f32 %v348_v62, %v128_v58 }
 0x12b   :  { %381 = vst [vmem:[#allocation2 + $0x68] sm:$0xff] %v365_v63  ;;  %389 = vst [vmem:[#allocation2 + $0x70] sm:$0xff] %v373_v0 }
 0x12c PF:  { %v413_v1 = vld [vmem:[%s1944_s4 + $0x10] sm:$0xff]  ;;  %v411_v2 = vld [vmem:[%s1944_s4] sm:$0xff]  ;;  %v1686_v3 = vmov 0   ;;  %v414_v4 = vld [vmem:[%s1944_s4 + $0x18] sm:$0xff]  ;;  %s1688_s23 = smov [#allocation13]  }
 0x12d   :  { %1519 = vset.pattern.permute.xlu1 %v1686_v3  ;;  %1518 = vset.pattern.permute.xlu0 %v1686_v3  ;;  %v412_v5 = vld [vmem:[%s1944_s4 + $0x8] sm:$0xff]  ;;  %v415_v7 = vld [vmem:[%s1944_s4 + $0x20] sm:$0xff]  ;;  %v1520_v8 = vld [vmem:[%s1945_s5 + $0x78] sm:$0xff]   ;;  %s1201_s24 = sshll.u32 %s1688_s23, 4  ;;  %s1202_s24 = int_to_ptr.vmem [resolvable:$true] %s1201_s24 }
 0x12e   :  { %439 = vperm.xlu1 %1519, %v413_v1   ;;  %429 = vperm.xlu0 %1518, %v411_v2   ;;  %v416_v6 = vld [vmem:[%s1944_s4 + $0x28] sm:$0xff]  ;;  %v1521_v9 = vld [vmem:[%s1945_s5 + $0x38] sm:$0xff]   ;;  %v1522_v10 = vld [vmem:[%s1945_s5 + $0x70] sm:$0xff]  }
 0x12f   :  { %984 = vmatprep.mubr.bf16.mxu1 %v1686_v3  ;;  %1379 = vmatprep.subr.bf16.mxu0 %v1520_v8  ;;  %v418_v11 = vld [vmem:[%s1944_s4 + $0x38] sm:$0xff]  ;;  %v1523_v12 = vld [vmem:[%s1945_s5 + $0x30] sm:$0xff]   ;;  %v1524_v14 = vld [vmem:[%s1945_s5 + $0x68] sm:$0xff]  }
 0x130   :  { %1380 = vmatpush3.bf16.msra.mxu0 %v1521_v9  ;;  %v417_v13 = vld [vmem:[%s1944_s4 + $0x30] sm:$0xff]  ;;  %v420_v15 = vld [vmem:[%s1944_s4 + $0x48] sm:$0xff]  ;;  %v419_v17 = vld [vmem:[%s1944_s4 + $0x40] sm:$0xff] }
 0x131   :  { %1381 = vmatprep.subr.bf16.mxu0 %v1522_v10  ;;  %v1525_v16 = vld [vmem:[%s1945_s5 + $0x28] sm:$0xff]   ;;  %v1526_v18 = vld [vmem:[%s1945_s5 + $0x60] sm:$0xff]   ;;  %v422_v19 = vld [vmem:[%s1944_s4 + $0x58] sm:$0xff] }
 0x132   :  { %444 = vperm.xlu1 %1519, %v414_v4   ;;  %434 = vperm.xlu0 %1518, %v412_v5   ;;  %v1527_v20 = vld [vmem:[%s1945_s5 + $0x20] sm:$0xff]   ;;  %v421_v21 = vld [vmem:[%s1944_s4 + $0x50] sm:$0xff]  ;;  %v1528_v22 = vld [vmem:[%s1945_s5 + $0x58] sm:$0xff]  }
 0x133   :  { %v424_v23 = vld [vmem:[%s1944_s4 + $0x68] sm:$0xff]  ;;  %v1529_v24 = vld [vmem:[%s1945_s5 + $0x18] sm:$0xff]   ;;  %v423_v25 = vld [vmem:[%s1944_s4 + $0x60] sm:$0xff] }
 0x134   :  { %1382 = vmatpush3.bf16.msra.mxu0 %v1523_v12  ;;  %v1530_v26 = vld [vmem:[%s1945_s5 + $0x50] sm:$0xff]   ;;  %v1536_v27 = vld [vmem:[#allocation9] sm:$0xff]   ;;  %v426_v29 = vld [vmem:[%s1944_s4 + $0x78] sm:$0xff] }
 0x135   :  { %1383 = vmatprep.subr.bf16.mxu0 %v1524_v14  ;;  %v1531_v28 = vld [vmem:[%s1945_s5 + $0x10] sm:$0xff]   ;;  %767 = vmatprep.mubr.bf16.mxu0 %v1536_v27  ;;  %v1532_v31 = vld [vmem:[%s1945_s5 + $0x48] sm:$0xff]   ;;  %v1534_v33 = vld [vmem:[%s1945_s5 + $0x40] sm:$0xff]  }
 0x136   :  { %454 = vperm.xlu1 %1519, %v416_v6   ;;  %449 = vperm.xlu0 %1518, %v415_v7   ;;  %v425_v30 = vld [vmem:[%s1944_s4 + $0x70] sm:$0xff]  ;;  %v1533_v32 = vld [vmem:[%s1945_s5 + $0x8] sm:$0xff]   ;;  %v1535_v34 = vld [vmem:[%s1945_s5] sm:$0xff]  }
 0x137   :  { %v1544_v35 = vld [vmem:[#allocation11 + $0x74] ss:$8 sps:$4 sm:$0xff]   ;;  %v1546_v36 = vld [vmem:[#allocation11 + $0x70] ss:$8 sps:$4 sm:$0xff]   ;;  %v1547_v37 = vld [vmem:[#allocation11 + $0x64] ss:$8 sps:$4 sm:$0xff]  }
 0x138   :  { %1384 = vmatpush3.bf16.msra.mxu0 %v1525_v16  ;;  %952 = vmatprep.subr.bf16.mxu1 %v1544_v35  ;;  %v1549_v38 = vld [vmem:[#allocation11 + $0x60] ss:$8 sps:$4 sm:$0xff]   ;;  %v1550_v39 = vld [vmem:[#allocation11 + $0x54] ss:$8 sps:$4 sm:$0xff]   ;;  %v1552_v40 = vld [vmem:[#allocation11 + $0x50] ss:$8 sps:$4 sm:$0xff]  }
 0x139   :  { %1385 = vmatprep.subr.bf16.mxu0 %v1526_v18  ;;  %953 = vmatpush1.bf16.msra.mxu1 %v1546_v36  ;;  %v1553_v41 = vld [vmem:[#allocation11 + $0x44] ss:$8 sps:$4 sm:$0xff]   ;;  %v1555_v42 = vld [vmem:[#allocation11 + $0x40] ss:$8 sps:$4 sm:$0xff]   ;;  %v1556_v43 = vld [vmem:[#allocation11 + $0x34] ss:$8 sps:$4 sm:$0xff]  }
 0x13a   :  { %464 = vperm.xlu1 %1519, %v418_v11   ;;  %459 = vperm.xlu0 %1518, %v417_v13   ;;  %v395_v45 = vld [vmem:[#allocation2 + $0x30] sm:$0xff]  ;;  %v396_v46 = vld [vmem:[#allocation2] sm:$0xff]  ;;  %v1537_v51 = vld [vmem:[#allocation9 + $0x8] sm:$0xff]  }
 0x13b   :  { %954 = vmatprep.subr.bf16.mxu1 %v1547_v37  ;;  %v397_v53 = vld [vmem:[#allocation2 + $0x58] sm:$0xff]  ;;  %v1538_v58 = vld [vmem:[#allocation9 + $0x10] sm:$0xff]   ;;  %v400_v61 = vld [vmem:[#allocation2 + $0x68] sm:$0xff] }
 0x13c   :  { %1386 = vmatpush3.bf16.msra.mxu0 %v1527_v20  ;;  %v398_v54 = vld [vmem:[#allocation2 + $0x18] sm:$0xff]  ;;  %v399_v63 = vld [vmem:[#allocation2 + $0x50] sm:$0xff]  ;;  %v402_v6 = vld [vmem:[#allocation2 + $0x48] sm:$0xff] }
 0x13d   :  { %1387 = vmatprep.subr.bf16.mxu0 %v1528_v22  ;;  %955 = vmatpush1.bf16.msra.mxu1 %v1549_v38  ;;  %v1539_v2 = vld [vmem:[#allocation9 + $0x18] sm:$0xff]   ;;  %v401_v8 = vld [vmem:[#allocation2 + $0x8] sm:$0xff]  ;;  %v1540_v11 = vld [vmem:[#allocation9 + $0x20] sm:$0xff]  }
 0x13e   :  { %474 = vperm.xlu1 %1519, %v420_v15   ;;  %469 = vperm.xlu0 %1518, %v419_v17   ;;  %v404_v14 = vld [vmem:[#allocation2 + $0x20] sm:$0xff]  ;;  %v406_v22 = vld [vmem:[#allocation2 + $0x38] sm:$0xff]  ;;  %v1542_v27 = vld [vmem:[#allocation9 + $0x30] sm:$0xff]  }
 0x13f   :  { %956 = vmatprep.subr.bf16.mxu1 %v1550_v39  ;;  %v403_v16 = vld [vmem:[#allocation2 + $0x40] sm:$0xff]  ;;  %v1543_v35 = vld [vmem:[#allocation9 + $0x38] sm:$0xff]   ;;  %v410_v38 = vld [vmem:[#allocation2 + $0x28] sm:$0xff] }
 0x140   :  { %1388 = vmatpush3.bf16.msra.mxu0 %v1529_v24  ;;  %v405_v24 = vld [vmem:[#allocation2 + $0x10] sm:$0xff] }
 0x141   :  { %1389 = vmatprep.subr.bf16.mxu0 %v1530_v26  ;;  %957 = vmatpush1.bf16.msra.mxu1 %v1552_v40  ;;  %v409_v40 = vld [vmem:[#allocation2 + $0x78] sm:$0xff] }
 0x142   :  { %484 = vperm.xlu1 %1519, %v422_v19   ;;  %479 = vperm.xlu0 %1518, %v421_v21   ;;  %v1541_v19 = vld [vmem:[#allocation9 + $0x28] sm:$0xff]  }
 0x143   :  { %958 = vmatprep.subr.bf16.mxu1 %v1553_v41 }
 0x144   :  { %1390 = vmatpush3.bf16.msra.mxu0 %v1531_v28 }
 0x145   :  { %1391 = vmatprep.subr.bf16.mxu0 %v1532_v31  ;;  %959 = vmatpush1.bf16.msra.mxu1 %v1555_v42 }
 0x146   :  { %494 = vperm.xlu1 %1519, %v424_v23   ;;  %489 = vperm.xlu0 %1518, %v423_v25  }
 0x147   :  { %960 = vmatprep.subr.bf16.mxu1 %v1556_v43 }
 0x148   :  { %1392 = vmatpush3.bf16.msra.mxu0 %v1533_v32  ;;  %v407_v32 = vld [vmem:[#allocation2 + $0x60] sm:$0xff] }
 0x149   :  { %1393 = vmatprep.subr.bf16.mxu0 %v1534_v33 }
 0x14a   :  { %504 = vperm.xlu1 %1519, %v426_v29   ;;  %499 = vperm.xlu0 %1518, %v425_v30   ;;  %v408_v30 = vld [vmem:[#allocation2 + $0x70] sm:$0xff] }
 0x14c   :  { %1394 = vmatpush3.bf16.msra.mxu0 %v1535_v34 }
 0x1a9   :  { %v430_v44 = vpop.permute.xlu0 %429  ;;  %v440_v47 = vpop.permute.xlu1 %439 }
 0x1aa   :  { %v507_v49 = vmul.f32 %v430_v44, %v395_v45  ;;  %v509_v56 = vmul.f32 %v440_v47, %v397_v53  ;;  %v1558_v44 = vld [vmem:[#allocation11 + $0x30] ss:$8 sps:$4 sm:$0xff]   ;;  %v1559_v45 = vld [vmem:[#allocation11 + $0x24] ss:$8 sps:$4 sm:$0xff]   ;;  %v1562_v47 = vld [vmem:[#allocation11 + $0x14] ss:$8 sps:$4 sm:$0xff]  }
 0x1ab   :  { %961 = vmatpush1.bf16.msra.mxu1 %v1558_v44 }
 0x1ac   :  { %962 = vmatprep.subr.bf16.mxu1 %v1559_v45 }
 0x1ad   :  { %v435_v48 = vpop.permute.xlu0 %434  ;;  %v445_v55 = vpop.permute.xlu1 %444 }
 0x1ae   :  { %v508_v50 = vmul.f32 %v435_v48, %v396_v46  ;;  %v510_v57 = vmul.f32 %v445_v55, %v398_v54  ;;  %v1561_v46 = vld [vmem:[#allocation11 + $0x20] ss:$8 sps:$4 sm:$0xff]   ;;  %v1564_v48 = vld [vmem:[#allocation11 + $0x10] ss:$8 sps:$4 sm:$0xff]  }
 0x1af   :  { %963 = vmatpush1.bf16.msra.mxu1 %v1561_v46  ;;  %v1882_v54 = vld [vmem:[%s1946_s6] ss:$0 sm:$0xff] }
 0x1b0   :  { %v523_v52 = vpack.c.bf16 %v508_v50, %v507_v49  ;;  %v524_v59 = vpack.c.bf16 %v510_v57, %v509_v56  ;;  %964 = vmatprep.subr.bf16.mxu1 %v1562_v47  ;;  %v1565_v49 = vld [vmem:[#allocation11 + $0x4] ss:$8 sps:$4 sm:$0xff]   ;;  %v1567_v50 = vld [vmem:[#allocation11] ss:$8 sps:$4 sm:$0xff]  }
 0x1b1   :  { %v455_v60 = vpop.permute.xlu1 %454  ;;  %v450_v62 = vpop.permute.xlu0 %449 }
 0x1b2   :  { %768 = vmatmul.mubr.bf16.vlgmr.msra.gmra.mxu0 %v523_v52  ;;  %v512_v0 = vmul.f32 %v455_v60, %v400_v61  ;;  %v511_v1 = vmul.f32 %v450_v62, %v399_v63 }
 0x1b3   :  { %775 = vmatprep.mubr.bf16.mxu0 %v1537_v51  ;;  %965 = vmatpush1.bf16.msra.mxu1 %v1564_v48 }
 0x1b4   :  { %v525_v4 = vpack.c.bf16 %v512_v0, %v511_v1  ;;  %966 = vmatprep.subr.bf16.mxu1 %v1565_v49 }
 0x1b5   :  { %v465_v5 = vpop.permute.xlu1 %464  ;;  %v460_v7 = vpop.permute.xlu0 %459 }
 0x1b6   :  { %v514_v9 = vmul.f32 %v465_v5, %v402_v6  ;;  %v513_v10 = vmul.f32 %v460_v7, %v401_v8 }
 0x1b7   :  { %967 = vmatpush1.bf16.msra.mxu1 %v1567_v50 }
 0x1b8   :  { %v526_v12 = vpack.c.bf16 %v514_v9, %v513_v10 }
 0x1b9   :  { %v475_v13 = vpop.permute.xlu1 %474  ;;  %v470_v15 = vpop.permute.xlu0 %469 }
 0x1ba   :  { %776 = vmatmul.mubr.bf16.gmra.mxu0 %v524_v59  ;;  %v516_v17 = vmul.f32 %v475_v13, %v404_v14  ;;  %v515_v18 = vmul.f32 %v470_v15, %v403_v16 }
 0x1bb   :  { %783 = vmatprep.mubr.bf16.mxu0 %v1538_v58 }
 0x1bc   :  { %v527_v20 = vpack.c.bf16 %v516_v17, %v515_v18 }
 0x1bd   :  { %v485_v21 = vpop.permute.xlu1 %484  ;;  %v480_v23 = vpop.permute.xlu0 %479 }
 0x1be   :  { %v518_v25 = vmul.f32 %v485_v21, %v406_v22  ;;  %v517_v26 = vmul.f32 %v480_v23, %v405_v24 }
 0x1c0   :  { %v528_v28 = vpack.c.bf16 %v518_v25, %v517_v26 }
 0x1c1   :  { %v495_v29 = vpop.permute.xlu1 %494  ;;  %v490_v31 = vpop.permute.xlu0 %489 }
 0x1c2   :  { %784 = vmatmul.mubr.bf16.gmra.mxu0 %v525_v4  ;;  %v520_v33 = vmul.f32 %v495_v29, %v408_v30  ;;  %v519_v34 = vmul.f32 %v490_v31, %v407_v32 }
 0x1c3   :  { %791 = vmatprep.mubr.bf16.mxu0 %v1539_v2 }
 0x1c4   :  { %v529_v36 = vpack.c.bf16 %v520_v33, %v519_v34 }
 0x1c5   :  { %v505_v37 = vpop.permute.xlu1 %504  ;;  %v500_v39 = vpop.permute.xlu0 %499 }
 0x1c6   :  { %v522_v41 = vmul.f32 %v505_v37, %v410_v38  ;;  %v521_v42 = vmul.f32 %v500_v39, %v409_v40 }
 0x1c8   :  { %v530_v43 = vpack.c.bf16 %v522_v41, %v521_v42 }
 0x1ca   :  { %792 = vmatmul.mubr.bf16.gmra.mxu0 %v526_v12 }
 0x1cb   :  { %799 = vmatprep.mubr.bf16.mxu0 %v1540_v11 }
 0x1d2   :  { %800 = vmatmul.mubr.bf16.gmra.mxu0 %v527_v20 }
 0x1d3   :  { %807 = vmatprep.mubr.bf16.mxu0 %v1541_v19 }
 0x1da   :  { %808 = vmatmul.mubr.bf16.gmra.mxu0 %v528_v28 }
 0x1db   :  { %815 = vmatprep.mubr.bf16.mxu0 %v1542_v27 }
 0x1e2   :  { %816 = vmatmul.mubr.bf16.gmra.mxu0 %v529_v36 }
 0x1e3   :  { %823 = vmatprep.mubr.bf16.mxu0 %v1543_v35 }
 0x1ea   :  { %824 = vmatmul.mubr.bf16.gmra.mxu0 %v530_v43 }
 0x272   :  { %v1395_v51 = vpop.f32.mrf.mxu0 }
 0x274   :  { %v1396_v52 = vpop.f32.mrf.mxu0 }
 0x275   :  { %v1397_v53 = vadd.f32 %v1396_v52, %v1395_v51 }
 0x276   :  { %v1398_v55 = vpop.f32.mrf.mxu0 }
 0x277   :  { %v770_v57 = vadd.f32 %v1397_v53, %v1882_v54 }
 0x278   :  { %v1399_v56 = vpop.f32.mrf.mxu0 }
 0x279   :  { %v1400_v58 = vadd.f32 %v1399_v56, %v1398_v55  ;;  %v832_v62 = vmax.f32 %v770_v57, 0.0 }
 0x27a   :  { %v1401_v59 = vpop.f32.mrf.mxu0 }
 0x27b   :  { %v773_v60 = vadd.f32 %v1400_v58, %v1882_v54 }
 0x27c   :  { %v1402_v61 = vpop.f32.mrf.mxu0 }
 0x27d   :  { %v833_v63 = vmax.f32 %v773_v60, 0.0  ;;  %v1403_v0 = vadd.f32 %v1402_v61, %v1401_v59 }
 0x27e   :  { %v1404_v1 = vpop.f32.mrf.mxu0 }
 0x27f   :  { %v848_v2 = vpack.c.bf16 %v833_v63, %v832_v62  ;;  %v778_v5 = vadd.f32 %v1403_v0, %v1882_v54 }
 0x280   :  { %v1405_v4 = vpop.f32.mrf.mxu0 }
 0x281   :  { %v1406_v6 = vadd.f32 %v1405_v4, %v1404_v1  ;;  %985 = vmatmul.mubr.bf16.vlgmr.msra.gmra.mxu1 %v848_v2  ;;  %v834_v10 = vmax.f32 %v778_v5, 0.0 }
 0x282   :  { %v1407_v7 = vpop.f32.mrf.mxu0  ;;  %994 = vmatprep.mubr.bf16.mxu1 %v1686_v3 }
 0x283   :  { %v781_v8 = vadd.f32 %v1406_v6, %v1882_v54 }
 0x284   :  { %v1408_v9 = vpop.f32.mrf.mxu0 }
 0x285   :  { %v835_v11 = vmax.f32 %v781_v8, 0.0  ;;  %v1409_v12 = vadd.f32 %v1408_v9, %v1407_v7 }
 0x286   :  { %v1410_v13 = vpop.f32.mrf.mxu0 }
 0x287   :  { %v849_v14 = vpack.c.bf16 %v835_v11, %v834_v10  ;;  %v786_v16 = vadd.f32 %v1409_v12, %v1882_v54 }
 0x288   :  { %v1411_v15 = vpop.f32.mrf.mxu0 }
 0x289   :  { %v1412_v17 = vadd.f32 %v1411_v15, %v1410_v13  ;;  %995 = vmatmul.mubr.bf16.gmra.mxu1 %v849_v14  ;;  %v836_v21 = vmax.f32 %v786_v16, 0.0  ;;  %v1910_v16 = vld [vmem:[%s1948_s8] ss:$0 sm:$0xff]  ;;  %s1687_s8 = smov [#allocation12]  }
 0x28a   :  { %v1413_v18 = vpop.f32.mrf.mxu0  ;;  %1004 = vmatprep.mubr.bf16.mxu1 %v1686_v3  ;;  %s1189_s21 = sshll.u32 %s1687_s8, 4  ;;  %s1190_s21 = int_to_ptr.vmem [resolvable:$true] %s1189_s21 }
 0x28b   :  { %v789_v19 = vadd.f32 %v1412_v17, %v1882_v54  ;;  %s1630_s25 = scalar_lea.vmem %s1190_s21, 1024  ;;  %p1635_p8 = scmp.lt.s32.totalorder %s1190_s21, %s1190_s21 }
 0x28c   :  { %v1414_v20 = vpop.f32.mrf.mxu0  ;;  %p1631_p7 = scmp.ne.s32.totalorder %s1190_s21, %s1630_s25  ;;  %p1636_p9 = scmp.lt.s32.totalorder %s1630_s25, %s1630_s25 }
 0x28d   :  { %v837_v22 = vmax.f32 %v789_v19, 0.0  ;;  %v1415_v23 = vadd.f32 %v1414_v20, %v1413_v18 }
 0x28e   :  { %v1416_v24 = vpop.f32.mrf.mxu0  ;;  %p1637_p10 = por %p1636_p9, %p1635_p8 }
 0x28f   :  { %v850_v25 = vpack.c.bf16 %v837_v22, %v836_v21  ;;  %v794_v27 = vadd.f32 %v1415_v23, %v1882_v54 }
 0x290   :  { %v1417_v26 = vpop.f32.mrf.mxu0  ;;  %p1638_p11 = pnand %p1637_p10, %p1631_p7 }
 0x291   :  { %v1418_v28 = vadd.f32 %v1417_v26, %v1416_v24  ;;  %1005 = vmatmul.mubr.bf16.gmra.mxu1 %v850_v25  ;;  %v838_v32 = vmax.f32 %v794_v27, 0.0 }
 0x292   :  { %v1419_v29 = vpop.f32.mrf.mxu0  ;;  %1014 = vmatprep.mubr.bf16.mxu1 %v1686_v3 }
 0x293   :  { %v797_v30 = vadd.f32 %v1418_v28, %v1882_v54 }
 0x294   :  { %v1420_v31 = vpop.f32.mrf.mxu0 }
 0x295   :  { %v839_v33 = vmax.f32 %v797_v30, 0.0  ;;  %v1421_v34 = vadd.f32 %v1420_v31, %v1419_v29 }
 0x296   :  { %v1422_v35 = vpop.f32.mrf.mxu0 }
 0x297   :  { %v851_v36 = vpack.c.bf16 %v839_v33, %v838_v32  ;;  %v802_v38 = vadd.f32 %v1421_v34, %v1882_v54 }
 0x298   :  { %v1423_v37 = vpop.f32.mrf.mxu0 }
 0x299   :  { %v1424_v39 = vadd.f32 %v1423_v37, %v1422_v35  ;;  %1015 = vmatmul.mubr.bf16.gmra.mxu1 %v851_v36  ;;  %v840_v43 = vmax.f32 %v802_v38, 0.0 }
 0x29a   :  { %v1425_v40 = vpop.f32.mrf.mxu0  ;;  %1024 = vmatprep.mubr.bf16.mxu1 %v1686_v3 }
 0x29b   :  { %v805_v41 = vadd.f32 %v1424_v39, %v1882_v54 }
 0x29c   :  { %v1426_v42 = vpop.f32.mrf.mxu0 }
 0x29d   :  { %v841_v44 = vmax.f32 %v805_v41, 0.0  ;;  %v1427_v45 = vadd.f32 %v1426_v42, %v1425_v40 }
 0x29e   :  { %v1428_v46 = vpop.f32.mrf.mxu0 }
 0x29f   :  { %v852_v47 = vpack.c.bf16 %v841_v44, %v840_v43  ;;  %v810_v49 = vadd.f32 %v1427_v45, %v1882_v54 }
 0x2a0   :  { %v1429_v48 = vpop.f32.mrf.mxu0 }
 0x2a1   :  { %v1430_v50 = vadd.f32 %v1429_v48, %v1428_v46  ;;  %1025 = vmatmul.mubr.bf16.gmra.mxu1 %v852_v47  ;;  %v842_v55 = vmax.f32 %v810_v49, 0.0 }
 0x2a2   :  { %v1431_v51 = vpop.f32.mrf.mxu0  ;;  %1034 = vmatprep.mubr.bf16.mxu1 %v1686_v3 }
 0x2a3   :  { %v813_v52 = vadd.f32 %v1430_v50, %v1882_v54 }
 0x2a4   :  { %v1432_v53 = vpop.f32.mrf.mxu0 }
 0x2a5   :  { %v843_v56 = vmax.f32 %v813_v52, 0.0  ;;  %v1433_v57 = vadd.f32 %v1432_v53, %v1431_v51 }
 0x2a6   :  { %v1434_v58 = vpop.f32.mrf.mxu0 }
 0x2a7   :  { %v853_v59 = vpack.c.bf16 %v843_v56, %v842_v55  ;;  %v818_v61 = vadd.f32 %v1433_v57, %v1882_v54 }
 0x2a8   :  { %v1435_v60 = vpop.f32.mrf.mxu0 }
 0x2a9   :  { %v1436_v62 = vadd.f32 %v1435_v60, %v1434_v58  ;;  %1035 = vmatmul.mubr.bf16.gmra.mxu1 %v853_v59  ;;  %v844_v2 = vmax.f32 %v818_v61, 0.0 }
 0x2aa   :  { %v1437_v63 = vpop.f32.mrf.mxu0  ;;  %1044 = vmatprep.mubr.bf16.mxu1 %v1686_v3 }
 0x2ab   :  { %v821_v0 = vadd.f32 %v1436_v62, %v1882_v54 }
 0x2ac   :  { %v1438_v1 = vpop.f32.mrf.mxu0 }
 0x2ad   :  { %v845_v4 = vmax.f32 %v821_v0, 0.0  ;;  %v1439_v5 = vadd.f32 %v1438_v1, %v1437_v63 }
 0x2ae   :  { %v1440_v6 = vpop.f32.mrf.mxu0 }
 0x2af   :  { %v854_v7 = vpack.c.bf16 %v845_v4, %v844_v2  ;;  %v826_v9 = vadd.f32 %v1439_v5, %v1882_v54 }
 0x2b0   :  { %v1441_v8 = vpop.f32.mrf.mxu0 }
 0x2b1   :  { %v1442_v10 = vadd.f32 %v1441_v8, %v1440_v6  ;;  %1045 = vmatmul.mubr.bf16.gmra.mxu1 %v854_v7  ;;  %v846_v12 = vmax.f32 %v826_v9, 0.0 }
 0x2b2   :  { %1054 = vmatprep.mubr.bf16.mxu1 %v1686_v3 }
 0x2b3   :  { %v829_v11 = vadd.f32 %v1442_v10, %v1882_v54 }
 0x2b5   :  { %v847_v13 = vmax.f32 %v829_v11, 0.0 }
 0x2b7   :  { %v855_v14 = vpack.c.bf16 %v847_v13, %v846_v12 }
 0x2b9   :  { %1055 = vmatmul.mubr.bf16.gmra.mxu1 %v855_v14 }
 0x341   :  { %v986_v15 = vpop.f32.mrf.mxu1 }
 0x343   :  { %v988_v17 = vpop.f32.mrf.mxu1 }
 0x344   :  { %v1152_v18 = vadd.f32 %v1910_v16, %v988_v17 }
 0x345   :  { %v990_v19 = vpop.f32.mrf.mxu1 }
 0x346   :  { %1168 = vst [vmem:[#allocation13] sm:$0xff] %v1152_v18  ;;  %v1319_v20 = vpack.c.bf16 %v990_v19, %v986_v15 }
 0x347   :  { %v992_v21 = vpop.f32.mrf.mxu1 }
 0x348   :  { %1320 = vst [vmem:[#allocation12] sm:$0xff] %v1319_v20   ;;  %v1153_v3 = vadd.f32 %v1910_v16, %v992_v21 }
 0x349   :  { %v996_v54 = vpop.f32.mrf.mxu1 }
 0x34a   :  { %1169 = vst [vmem:[#allocation13 + $0x8] sm:$0xff] %v1153_v3 }
 0x34b   :  { %v998_v22 = vpop.f32.mrf.mxu1 }
 0x34c   :  { %v1154_v23 = vadd.f32 %v1910_v16, %v998_v22 }
 0x34d   :  { %v1000_v24 = vpop.f32.mrf.mxu1 }
 0x34e   :  { %1170 = vst [vmem:[#allocation13 + $0x10] sm:$0xff] %v1154_v23  ;;  %v1324_v25 = vpack.c.bf16 %v1000_v24, %v996_v54 }
 0x34f   :  { %v1002_v26 = vpop.f32.mrf.mxu1 }
 0x350   :  { %1356 = vst [vmem:[#allocation12 + $0x8] sm:$0xff] %v1324_v25   ;;  %v1155_v27 = vadd.f32 %v1910_v16, %v1002_v26 }
 0x351   :  { %v1006_v28 = vpop.f32.mrf.mxu1 }
 0x352   :  { %1171 = vst [vmem:[#allocation13 + $0x18] sm:$0xff] %v1155_v27 }
 0x353   :  { %v1008_v29 = vpop.f32.mrf.mxu1 }
 0x354   :  { %v1156_v30 = vadd.f32 %v1910_v16, %v1008_v29 }
 0x355   :  { %v1010_v31 = vpop.f32.mrf.mxu1 }
 0x356   :  { %1172 = vst [vmem:[#allocation13 + $0x20] sm:$0xff] %v1156_v30  ;;  %v1329_v32 = vpack.c.bf16 %v1010_v31, %v1006_v28 }
 0x357   :  { %v1012_v33 = vpop.f32.mrf.mxu1 }
 0x358   :  { %1357 = vst [vmem:[#allocation12 + $0x10] sm:$0xff] %v1329_v32   ;;  %v1157_v34 = vadd.f32 %v1910_v16, %v1012_v33 }
 0x359   :  { %v1016_v35 = vpop.f32.mrf.mxu1 }
 0x35a   :  { %1173 = vst [vmem:[#allocation13 + $0x28] sm:$0xff] %v1157_v34 }
 0x35b   :  { %v1018_v36 = vpop.f32.mrf.mxu1 }
 0x35c   :  { %v1158_v37 = vadd.f32 %v1910_v16, %v1018_v36 }
 0x35d   :  { %v1020_v38 = vpop.f32.mrf.mxu1 }
 0x35e   :  { %1174 = vst [vmem:[#allocation13 + $0x30] sm:$0xff] %v1158_v37  ;;  %v1334_v39 = vpack.c.bf16 %v1020_v38, %v1016_v35 }
 0x35f   :  { %v1022_v40 = vpop.f32.mrf.mxu1 }
 0x360   :  { %1358 = vst [vmem:[#allocation12 + $0x18] sm:$0xff] %v1334_v39   ;;  %v1159_v41 = vadd.f32 %v1910_v16, %v1022_v40 }
 0x361   :  { %v1026_v42 = vpop.f32.mrf.mxu1 }
 0x362   :  { %1175 = vst [vmem:[#allocation13 + $0x38] sm:$0xff] %v1159_v41 }
 0x363   :  { %v1028_v43 = vpop.f32.mrf.mxu1 }
 0x364   :  { %v1160_v44 = vadd.f32 %v1910_v16, %v1028_v43 }
 0x365   :  { %v1030_v45 = vpop.f32.mrf.mxu1 }
 0x366   :  { %1176 = vst [vmem:[#allocation13 + $0x40] sm:$0xff] %v1160_v44  ;;  %v1339_v46 = vpack.c.bf16 %v1030_v45, %v1026_v42 }
 0x367   :  { %v1032_v47 = vpop.f32.mrf.mxu1 }
 0x368   :  { %1359 = vst [vmem:[#allocation12 + $0x20] sm:$0xff] %v1339_v46   ;;  %v1161_v48 = vadd.f32 %v1910_v16, %v1032_v47 }
 0x369   :  { %v1036_v49 = vpop.f32.mrf.mxu1 }
 0x36a   :  { %1177 = vst [vmem:[#allocation13 + $0x48] sm:$0xff] %v1161_v48 }
 0x36b   :  { %v1038_v50 = vpop.f32.mrf.mxu1 }
 0x36c   :  { %v1162_v51 = vadd.f32 %v1910_v16, %v1038_v50 }
 0x36d   :  { %v1040_v52 = vpop.f32.mrf.mxu1 }
 0x36e   :  { %1178 = vst [vmem:[#allocation13 + $0x50] sm:$0xff] %v1162_v51  ;;  %v1344_v53 = vpack.c.bf16 %v1040_v52, %v1036_v49 }
 0x36f   :  { %v1042_v55 = vpop.f32.mrf.mxu1 }
 0x370   :  { %1360 = vst [vmem:[#allocation12 + $0x28] sm:$0xff] %v1344_v53   ;;  %v1163_v56 = vadd.f32 %v1910_v16, %v1042_v55 }
 0x371   :  { %v1046_v57 = vpop.f32.mrf.mxu1 }
 0x372   :  { %1179 = vst [vmem:[#allocation13 + $0x58] sm:$0xff] %v1163_v56 }
 0x373   :  { %v1048_v58 = vpop.f32.mrf.mxu1 }
 0x374   :  { %v1164_v59 = vadd.f32 %v1910_v16, %v1048_v58 }
 0x375   :  { %v1050_v60 = vpop.f32.mrf.mxu1 }
 0x376   :  { %1180 = vst [vmem:[#allocation13 + $0x60] sm:$0xff] %v1164_v59  ;;  %v1349_v61 = vpack.c.bf16 %v1050_v60, %v1046_v57 }
 0x377   :  { %v1052_v62 = vpop.f32.mrf.mxu1 }
 0x378   :  { %1361 = vst [vmem:[#allocation12 + $0x30] sm:$0xff] %v1349_v61   ;;  %v1165_v63 = vadd.f32 %v1910_v16, %v1052_v62 }
 0x379   :  { %v1056_v0 = vpop.f32.mrf.mxu1 }
 0x37a   :  { %1181 = vst [vmem:[#allocation13 + $0x68] sm:$0xff] %v1165_v63 }
 0x37b   :  { %v1058_v1 = vpop.f32.mrf.mxu1 }
 0x37c   :  { %v1166_v2 = vadd.f32 %v1910_v16, %v1058_v1 }
 0x37d   :  { %v1060_v4 = vpop.f32.mrf.mxu1 }
 0x37e   :  { %1182 = vst [vmem:[#allocation13 + $0x70] sm:$0xff] %v1166_v2  ;;  %v1354_v5 = vpack.c.bf16 %v1060_v4, %v1056_v0 }
 0x37f   :  { %v1062_v6 = vpop.f32.mrf.mxu1 }
 0x380   :  { %1362 = vst [vmem:[#allocation12 + $0x38] sm:$0xff] %v1354_v5   ;;  %v1167_v7 = vadd.f32 %v1910_v16, %v1062_v6 }
 0x381   :  { %1641 = shalt.err (!%p1638_p11)
}
 0x382   :  { %1195 = dma.vmem_to_hbm [thread:$0]  %s1190_s21, 1024, %s1949_s9, [#allocation8], %s1679_s22, %s1679_s22, %s1680_s1   ;;  %1183 = vst [vmem:[#allocation13 + $0x78] sm:$0xff] %v1167_v7 }
 0x383   :  { %s1650_s28 = scalar_lea.vmem %s1202_s24, 2048  ;;  %p1655_p13 = scmp.lt.s32.totalorder %s1202_s24, %s1202_s24 }
 0x384   :  { %p1651_p12 = scmp.ne.s32.totalorder %s1202_s24, %s1650_s28  ;;  %p1656_p0 = scmp.lt.s32.totalorder %s1650_s28, %s1650_s28 }
 0x386   :  { %p1657_p1 = por %p1656_p0, %p1655_p13 }
 0x388   :  { %p1658_p2 = pnand %p1657_p1, %p1651_p12 }
 0x38a   :  { %1661 = shalt.err (!%p1658_p2)
}
 0x38b   :  { %1207 = dma.vmem_to_hbm [thread:$0]  %s1202_s24, 2048, %s1950_s10, [#allocation14], %s1683_s2, %s1683_s2, %s1684_s16  }
 0x38c   :  { %1674 = dma.done.wait [#allocation8], 1024  }
 0x38d   :  { %1675 = vsyncadd [#allocation8], 4294966272 }
 0x38e   :  { %1676 = dma.done.wait [#allocation14], 2048  }
 0x38f   :  { %1677 = vsyncadd [#allocation14], 4294965248 }
 0x390   :  { %1214 = vsyncpa [#allocation7], 1 }
 0x391   :  { %1215 = vsyncpa [#allocation10], 1 }
 0x392   :  { %1216 = vsyncpa [#allocation8], 1 }
 0x393   :  { %1217 = vsyncpa [#allocation14], 1 }

</bundles_post_ra>
